<compile_context>
chip_gen: v7x
topology: tpu7x:2x2x1
jax: 0.10.0
libtpu: 0.0.40
codegen_flags: <defaults>
</compile_context>

<pallas_src>
import functools
import math

import jax
import jax.numpy as jnp
from jax.experimental import pallas as pl
from jax.experimental.pallas import tpu as pltpu

# Finite "-inf": keeps exp()/max() NaN-free.  Python float (NOT jnp.float32),
# so it lowers as a literal instead of a captured kernel constant.
_NEG = -1e30


def _nt_xent_tile_kernel(row_ref, col_ref, lse_ref, m_ref, l_ref, *,
                         batch: int, row_tile: int, col_tile: int,
                         rq_col: int, num_col: int, inv_t: float,
                         has_pad: bool):
    """One (row_tile, col_tile) step of the streaming online-LSE NT-Xent loss.

    row_ref : (ROW_TILE, D)  rows of projs (compute dtype, e.g. bf16)
    col_ref : (COL_TILE, D)  rows of projs used as columns of this S tile
    lse_ref : (ROW_TILE, 1)  per-row log-sum-exp (written at the last col tile)
    m_ref   : (ROW_TILE, 1)  f32 running max
    l_ref   : (ROW_TILE, 1)  f32 running sum-of-exp
    """
    i = pl.program_id(0)          # row-tile index
    j = pl.program_id(1)          # column-tile index (innermost streaming axis)

    # ---- init running statistics at the first column tile --------------------
    @pl.when(j == 0)
    def _init():
        m_ref[...] = jnp.full_like(m_ref, _NEG)
        l_ref[...] = jnp.zeros_like(l_ref)

    # ---- similarity tile on the MXU: contract last dim of both operands ------
    # bf16 operands, f32 accumulation; 1/temperature folded once into the f32 S.
    s = jax.lax.dot_general(
        row_ref[...], col_ref[...],
        dimension_numbers=(((1,), (1,)), ((), ())),
        preferred_element_type=jnp.float32) * inv_t      # (ROW_TILE, COL_TILE)

    # ---- value-path masking (no VMEM scratch round trip) ----------------------
    r_it = jax.lax.broadcasted_iota(jnp.int32, (row_tile, col_tile), 0)
    c_it = jax.lax.broadcasted_iota(jnp.int32, (row_tile, col_tile), 1)
    # Self-similarity diagonal of the full 2B x 2B matrix (post-scale mask).
    s = jnp.where(i * row_tile + r_it == j * col_tile + c_it, _NEG, s)
    if has_pad:
        # Zero-padded rows appended to each half must not contribute as columns.
        col_in_half = (j % rq_col) * col_tile + c_it
        s = jnp.where(col_in_half < batch, s, _NEG)

    # ---- online log-sum-exp update --------------------------------------------
    m_prev = m_ref[...]
    m_new = jnp.maximum(m_prev, jnp.max(s, axis=1, keepdims=True))
    alpha = jnp.exp(m_prev - m_new)
    # TODO(synk): on v6e/v7x the tile-wide exp could run in bf16 (packed EUP,
    # ~2x) -- kept f32 so numerics are identical across generations incl. v5e.
    p = jnp.exp(s - m_new)
    l_ref[...] = alpha * l_ref[...] + jnp.sum(p, axis=1, keepdims=True)
    m_ref[...] = m_new

    # ---- finalize: per-row log-sum-exp (positive logit subtracted in glue) ----
    @pl.when(j == num_col - 1)
    def _finalize():
        lse_ref[...] = jnp.log(l_ref[...]) + m_ref[...]


def nt_xent_loss(queries: jax.Array, keys: jax.Array, temperature: float = 0.1,
                 *, row_block: int = 512, col_block: int = 512,
                 compute_dtype=jnp.bfloat16) -> jax.Array:
    """Pallas TPU implementation of NtXentLoss.forward(queries, keys)."""
    assert queries.shape == keys.shape and queries.ndim == 2
    b, d = queries.shape
    # TODO(synk): b == 1 divides by zero (2*(b-1)); mirrors the PyTorch module.
    inv_t = float(1.0 / temperature)

    # Cast once for the MXU (bf16 operands, f32 accumulation).  The positive
    # logit is computed from the SAME cast values so precisions line up.
    q_c = queries.astype(compute_dtype)
    k_c = keys.astype(compute_dtype)

    # Positive-pair logit q_i . k_i / T (identical for row i and row b+i):
    # O(b*d) elementwise glue instead of a third full-width kernel input.
    pos = jnp.sum(q_c.astype(jnp.float32) * k_c.astype(jnp.float32),
                  axis=1) * inv_t                                    # (b,)

    # Clamp tiles for tiny batches (no point padding 4 rows up to 512).
    unit = ((b + 7) // 8) * 8
    row_tile = max(8, min(int(row_block), unit))
    col_tile = max(8, min(int(col_block), unit))
    assert row_tile % 8 == 0 and col_tile % 8 == 0
    # Pad each half so it is a whole number of both row tiles and column tiles.
    lcm = math.lcm(row_tile, col_tile)
    b_pad = pl.cdiv(b, lcm) * lcm
    pad = b_pad - b
    if pad:
        q_c = jnp.pad(q_c, ((0, pad), (0, 0)))
        k_c = jnp.pad(k_c, ((0, pad), (0, 0)))
    projs = jnp.concatenate([q_c, k_c], axis=0)                      # (2*b_pad, d)

    n_pad = 2 * b_pad
    num_row = n_pad // row_tile
    num_col = n_pad // col_tile
    rq_col = b_pad // col_tile

    kernel = functools.partial(
        _nt_xent_tile_kernel,
        batch=b, row_tile=row_tile, col_tile=col_tile, rq_col=rq_col,
        num_col=num_col, inv_t=inv_t, has_pad=bool(pad))

    in_itemsize = jnp.dtype(projs.dtype).itemsize
    # Double-buffered inputs + stats scratch (lane-padded) + f32 S temporaries.
    vmem_need = (2 * (row_tile + col_tile) * d * in_itemsize
                 + 4 * row_tile * 128 * 4
                 + 4 * row_tile * col_tile * 4)
    # Cap at 56 MiB so a large-tile config never overshoots v7x's 64 MiB VMEM;
    # v5e/v6e users can raise both the blocks and this cap.
    vmem_limit = int(min(56 * 2**20, max(32 * 2**20, vmem_need + 8 * 2**20)))

    lse = pl.pallas_call(
        kernel,
        out_shape=jax.ShapeDtypeStruct((n_pad, 1), jnp.float32),
        grid_spec=pltpu.PrefetchScalarGridSpec(
            num_scalar_prefetch=0,
            grid=(num_row, num_col),
            in_specs=[
                # Row tile: re-fetched only when the row-tile index changes.
                pl.BlockSpec((row_tile, d), lambda i, j: (i, 0)),
                # Column tile: streamed along the innermost reduction axis.
                # TODO(synk): if xprof shows exposed column DMA at small d, add
                # pipeline_mode=pl.Buffered(3) here.
                pl.BlockSpec((col_tile, d), lambda i, j: (j, 0)),
            ],
            out_specs=pl.BlockSpec((row_tile, 1), lambda i, j: (i, 0)),
            scratch_shapes=[
                pltpu.VMEM((row_tile, 1), jnp.float32),   # running max m
                pltpu.VMEM((row_tile, 1), jnp.float32),   # running sum l
            ]),
        compiler_params=pltpu.CompilerParams(
            dimension_semantics=("parallel", "arbitrary"),
            vmem_limit_bytes=vmem_limit),
        cost_estimate=pl.CostEstimate(
            flops=2 * n_pad * n_pad * d,
            transcendentals=n_pad * n_pad,
            bytes_accessed=(num_row + 1) * n_pad * d * in_itemsize + n_pad * 4),
    )(projs, projs)

    lse = lse[:, 0]
    # Drop padded rows, subtract the positive logits (each appears twice), norm.
    lse_valid = jnp.sum(lse[:b]) + jnp.sum(lse[b_pad:b_pad + b])
    return (lse_valid - 2.0 * jnp.sum(pos)) / (2.0 * (b - 1))


def _reference_nt_xent(queries, keys, temperature=0.1, compute_dtype=None):
    """Pure-JAX reference mirroring the PyTorch module.

    compute_dtype: optionally round projs exactly like the kernel (bf16) so the
    comparison isolates kernel correctness from the compute-dtype choice.
    """
    b = queries.shape[0]
    n = 2 * b
    projs = jnp.concatenate([queries, keys], axis=0)
    if compute_dtype is not None:
        projs = projs.astype(compute_dtype).astype(jnp.float32)
    logits = jnp.matmul(projs, projs.T,
                        precision=jax.lax.Precision.HIGHEST) / temperature
    logits = jnp.where(jnp.eye(n, dtype=bool), -jnp.inf, logits)
    lse = jax.scipy.special.logsumexp(logits, axis=1)
    pos_cols = jnp.concatenate([jnp.arange(b) + b, jnp.arange(b)])
    pos = logits[jnp.arange(n), pos_cols]
    return jnp.sum(lse - pos) / (2 * (b - 1))


if __name__ == "__main__":
    key = jax.random.PRNGKey(0)
    kq, kk = jax.random.split(key)

    # 1) Structural check (padding path): f32 compute end-to-end vs the exact
    #    PyTorch-mirror reference.  Loose tolerance absorbs any TPU
    #    default-matmul-precision difference between XLA and Mosaic f32 dots.
    b, d = 4, 32
    q = jax.random.normal(kq, (b, d), dtype=jnp.float32)
    k = jax.random.normal(kk, (b, d), dtype=jnp.float32)
    loss = nt_xent_loss(q, k, temperature=0.1, compute_dtype=jnp.float32)
    jax.block_until_ready(loss)
    ref = _reference_nt_xent(q, k, temperature=0.1)
    assert jnp.allclose(loss, ref, rtol=2e-2, atol=2e-2), (loss, ref)

    # 2) Multi-tile rectangular grid (ROW_TILE != COL_TILE), no padding,
    #    default bf16 compute vs the dtype-matched reference.
    b2, d2 = 16, 32
    q2 = jax.random.normal(kq, (b2, d2), dtype=jnp.float32)
    k2 = jax.random.normal(kk, (b2, d2), dtype=jnp.float32)
    loss2 = nt_xent_loss(q2, k2, temperature=0.1, row_block=16, col_block=8)
    jax.block_until_ready(loss2)
    ref2 = _reference_nt_xent(q2, k2, temperature=0.1, compute_dtype=jnp.bfloat16)
    assert jnp.allclose(loss2, ref2, rtol=1e-3, atol=1e-3), (loss2, ref2)

    # 3) Padding with multiple tiles per half (b not a multiple of the tile).
    b3, d3 = 12, 64
    q3 = jax.random.normal(kq, (b3, d3), dtype=jnp.float32)
    k3 = jax.random.normal(kk, (b3, d3), dtype=jnp.float32)
    loss3 = nt_xent_loss(q3, k3, temperature=0.1, row_block=8, col_block=8)
    jax.block_until_ready(loss3)
    ref3 = _reference_nt_xent(q3, k3, temperature=0.1, compute_dtype=jnp.bfloat16)
    assert jnp.allclose(loss3, ref3, rtol=1e-3, atol=1e-3), (loss3, ref3)

    # 4) Default (clamped) non-power-of-two tiles, bf16 compute.
    b4, d4 = 96, 64
    q4 = jax.random.normal(kq, (b4, d4), dtype=jnp.float32)
    k4 = jax.random.normal(kk, (b4, d4), dtype=jnp.float32)
    loss4 = nt_xent_loss(q4, k4, temperature=0.1)
    jax.block_until_ready(loss4)
    ref4 = _reference_nt_xent(q4, k4, temperature=0.1, compute_dtype=jnp.bfloat16)
    assert jnp.allclose(loss4, ref4, rtol=1e-3, atol=1e-3), (loss4, ref4)

    print("KERNEL_OK")
</pallas_src>

<mosaic_0001>
module attributes {stable_mosaic.version = 11 : i64} {
  func.func @_nt_xent_tile_kernel(%arg0: i32, %arg1: i32, %arg2: memref<8x32xf32, #tpu.memory_space<vmem>>, %arg3: memref<8x32xf32, #tpu.memory_space<vmem>>, %arg4: memref<8x1xf32, #tpu.memory_space<vmem>>, %arg5: memref<8x1xf32, #tpu.memory_space<vmem>>, %arg6: memref<8x1xf32, #tpu.memory_space<vmem>>) attributes {dimension_semantics = [#tpu.dimension_semantics<parallel>, #tpu.dimension_semantics<arbitrary>], iteration_bounds = array<i64: 2, 2>, scalar_prefetch = 0 : i64, scratch_operands = 2 : i64, tpu.core_type = #tpu.core_type<tc>, window_params = [{transform_indices = @transform_0, window_bounds = array<i64: 8, 32>}, {transform_indices = @transform_1, window_bounds = array<i64: 8, 32>}, {transform_indices = @transform_2, window_bounds = array<i64: 8, 1>}]} {
    %c0_i32 = arith.constant 0 : i32
    %0 = arith.cmpi eq, %arg1, %c0_i32 : i32
    %1 = arith.extui %0 : i1 to i32
    %c0_i32_0 = arith.constant 0 : i32
    %2 = arith.cmpi ne, %1, %c0_i32_0 : i32
    scf.if %2 {
      %cst_26 = arith.constant -1.000000e+30 : f32
      %55 = vector.broadcast %cst_26 : f32 to vector<8x1xf32>
      %c0_27 = arith.constant 0 : index
      %c0_28 = arith.constant 0 : index
      %56 = vector.load %arg5[%c0_27, %c0_28] : memref<8x1xf32, #tpu.memory_space<vmem>>, vector<8x1xf32>
      tpu.vector_store %arg5[%c0_27, %c0_28], %55 {strides = array<i32>} : memref<8x1xf32, #tpu.memory_space<vmem>>, vector<8x1xf32>,
      %cst_29 = arith.constant 0.000000e+00 : f32
      %57 = vector.broadcast %cst_29 : f32 to vector<8x1xf32>
      %c0_30 = arith.constant 0 : index
      %c0_31 = arith.constant 0 : index
      %58 = vector.load %arg6[%c0_30, %c0_31] : memref<8x1xf32, #tpu.memory_space<vmem>>, vector<8x1xf32>
      tpu.vector_store %arg6[%c0_30, %c0_31], %57 {strides = array<i32>} : memref<8x1xf32, #tpu.memory_space<vmem>>, vector<8x1xf32>,
    } else {
    }
    %c0 = arith.constant 0 : index
    %c0_1 = arith.constant 0 : index
    %3 = vector.load %arg2[%c0, %c0_1] : memref<8x32xf32, #tpu.memory_space<vmem>>, vector<8x32xf32>
    %c0_2 = arith.constant 0 : index
    %c0_3 = arith.constant 0 : index
    %4 = vector.load %arg3[%c0_2, %c0_3] : memref<8x32xf32, #tpu.memory_space<vmem>>, vector<8x32xf32>
    %cst = arith.constant dense<0.000000e+00> : vector<8x8xf32>
    %5 = tpu.matmul %3, %4, %cst {dimension_numbers = #tpu.dot_dimension_numbers<[1], [1], [0], [0], [0, 0, 1, 0], [], []>} : vector<8x32xf32>, vector<8x32xf32>, vector<8x8xf32> -> vector<8x8xf32>
    %cst_4 = arith.constant 1.000000e+01 : f32
    %6 = vector.broadcast %cst_4 : f32 to vector<8x8xf32>
    %7 = arith.mulf %5, %6 : vector<8x8xf32>
    %8 = tpu.iota {dimensions = array<i32: 0>} : vector<8x8xi32>
    %9 = tpu.iota {dimensions = array<i32: 1>} : vector<8x8xi32>
    %c8_i32 = arith.constant 8 : i32
    %10 = arith.muli %arg0, %c8_i32 : i32
    %11 = vector.broadcast %10 : i32 to vector<8x8xi32>
    %12 = arith.addi %11, %8 : vector<8x8xi32>
    %c8_i32_5 = arith.constant 8 : i32
    %13 = arith.muli %arg1, %c8_i32_5 : i32
    %14 = vector.broadcast %13 : i32 to vector<8x8xi32>
    %15 = arith.addi %14, %9 : vector<8x8xi32>
    %16 = arith.cmpi eq, %12, %15 : vector<8x8xi32>
    %cst_6 = arith.constant -1.000000e+30 : f32
    %17 = vector.broadcast %cst_6 : f32 to vector<8x8xf32>
    %18 = arith.select %16, %17, %7 : vector<8x8xi1>, vector<8x8xf32>
    %c1_i32 = arith.constant 1 : i32
    %c0_i32_7 = arith.constant 0 : i32
    %19 = arith.cmpi eq, %c1_i32, %c0_i32_7 : i32
    %c1_i32_8 = arith.constant 1 : i32
    %20 = arith.select %19, %c1_i32_8, %c1_i32 : i32
    %21 = arith.remsi %arg1, %20 : i32
    %c0_i32_9 = arith.constant 0 : i32
    %22 = arith.cmpi ne, %21, %c0_i32_9 : i32
    %c0_i32_10 = arith.constant 0 : i32
    %23 = arith.cmpi slt, %21, %c0_i32_10 : i32
    %c0_i32_11 = arith.constant 0 : i32
    %24 = arith.cmpi slt, %20, %c0_i32_11 : i32
    %25 = arith.xori %23, %24 : i1
    %26 = arith.andi %25, %22 : i1
    %27 = arith.addi %21, %20 : i32
    %28 = arith.select %26, %27, %21 : i32
    %c8_i32_12 = arith.constant 8 : i32
    %29 = arith.muli %28, %c8_i32_12 : i32
    %30 = vector.broadcast %29 : i32 to vector<8x8xi32>
    %31 = arith.addi %30, %9 : vector<8x8xi32>
    %c4_i32 = arith.constant 4 : i32
    %32 = vector.broadcast %c4_i32 : i32 to vector<8x8xi32>
    %33 = arith.cmpi slt, %31, %32 : vector<8x8xi32>
    %cst_13 = arith.constant -1.000000e+30 : f32
    %34 = vector.broadcast %cst_13 : f32 to vector<8x8xf32>
    %35 = arith.select %33, %18, %34 : vector<8x8xi1>, vector<8x8xf32>
    %c0_14 = arith.constant 0 : index
    %c0_15 = arith.constant 0 : index
    %36 = vector.load %arg5[%c0_14, %c0_15] : memref<8x1xf32, #tpu.memory_space<vmem>>, vector<8x1xf32>
    %cst_16 = arith.constant dense<0xFF800000> : vector<8xf32>
    %37 = vector.multi_reduction <maximumf>, %35, %cst_16 [1] : vector<8x8xf32> to vector<8xf32>
    %38 = vector.shape_cast %37 : vector<8xf32> to vector<8x1xf32>
    %39 = arith.maximumf %36, %38 : vector<8x1xf32>
    %40 = arith.subf %36, %39 : vector<8x1xf32>
    %41 = math.exp %40 : vector<8x1xf32>
    %42 = vector.broadcast %39 : vector<8x1xf32> to vector<8x8xf32>
    %43 = arith.subf %35, %42 : vector<8x8xf32>
    %44 = math.exp %43 : vector<8x8xf32>
    %c0_17 = arith.constant 0 : index
    %c0_18 = arith.constant 0 : index
    %45 = vector.load %arg6[%c0_17, %c0_18] : memref<8x1xf32, #tpu.memory_space<vmem>>, vector<8x1xf32>
    %46 = arith.mulf %41, %45 : vector<8x1xf32>
    %cst_19 = arith.constant dense<0.000000e+00> : vector<8xf32>
    %47 = vector.multi_reduction <add>, %44, %cst_19 [1] : vector<8x8xf32> to vector<8xf32>
    %48 = vector.shape_cast %47 : vector<8xf32> to vector<8x1xf32>
    %49 = arith.addf %46, %48 : vector<8x1xf32>
    %c0_20 = arith.constant 0 : index
    %c0_21 = arith.constant 0 : index
    %50 = vector.load %arg6[%c0_20, %c0_21] : memref<8x1xf32, #tpu.memory_space<vmem>>, vector<8x1xf32>
    tpu.vector_store %arg6[%c0_20, %c0_21], %49 {strides = array<i32>} : memref<8x1xf32, #tpu.memory_space<vmem>>, vector<8x1xf32>,
    %c0_22 = arith.constant 0 : index
    %c0_23 = arith.constant 0 : index
    %51 = vector.load %arg5[%c0_22, %c0_23] : memref<8x1xf32, #tpu.memory_space<vmem>>, vector<8x1xf32>
    tpu.vector_store %arg5[%c0_22, %c0_23], %39 {strides = array<i32>} : memref<8x1xf32, #tpu.memory_space<vmem>>, vector<8x1xf32>,
    %c1_i32_24 = arith.constant 1 : i32
    %52 = arith.cmpi eq, %arg1, %c1_i32_24 : i32
    %53 = arith.extui %52 : i1 to i32
    %c0_i32_25 = arith.constant 0 : i32
    %54 = arith.cmpi ne, %53, %c0_i32_25 : i32
    scf.if %54 {
      %c0_26 = arith.constant 0 : index
      %c0_27 = arith.constant 0 : index
      %55 = vector.load %arg6[%c0_26, %c0_27] : memref<8x1xf32, #tpu.memory_space<vmem>>, vector<8x1xf32>
      %56 = math.log %55 : vector<8x1xf32>
      %c0_28 = arith.constant 0 : index
      %c0_29 = arith.constant 0 : index
      %57 = vector.load %arg5[%c0_28, %c0_29] : memref<8x1xf32, #tpu.memory_space<vmem>>, vector<8x1xf32>
      %58 = arith.addf %56, %57 : vector<8x1xf32>
      %c0_30 = arith.constant 0 : index
      %c0_31 = arith.constant 0 : index
      %59 = vector.load %arg4[%c0_30, %c0_31] : memref<8x1xf32, #tpu.memory_space<vmem>>, vector<8x1xf32>
      tpu.vector_store %arg4[%c0_30, %c0_31], %58 {strides = array<i32>} : memref<8x1xf32, #tpu.memory_space<vmem>>, vector<8x1xf32>,
    } else {
    }
    return
  }
  func.func @transform_0(%arg0: i32, %arg1: i32) -> (i32, i32) {
    %c0_i32 = arith.constant 0 : i32
    %c0_i32_0 = arith.constant 0 : i32
    return %arg0, %c0_i32 : i32, i32
  }
  func.func @transform_1(%arg0: i32, %arg1: i32) -> (i32, i32) {
    %c0_i32 = arith.constant 0 : i32
    %c0_i32_0 = arith.constant 0 : i32
    return %arg1, %c0_i32 : i32, i32
  }
  func.func @transform_2(%arg0: i32, %arg1: i32) -> (i32, i32) {
    %c0_i32 = arith.constant 0 : i32
    %c0_i32_0 = arith.constant 0 : i32
    return %arg0, %c0_i32 : i32, i32
  }
}

</mosaic_0001>

<bundles_post_ra>
// kernel: tpu_custom_call.1
= control target key start
LH: loop header
LB: loop body
LE: loop exit
PB: predicated region body
PF: predicated region fallthrough
CT: control target
= control target key end

     0   :  { %7 = vsyncpa [#allocation5], 0  ;;  %s1026_s0 = inlined_call_operand.hbm [shape: f32[16,32], index: 0, kind: input, shape index: {}]   ;;  %s1027_s1 = inlined_call_operand.hbm [shape: f32[16,32], index: 1, kind: input, shape index: {}]   ;;  %s1028_s2 = inlined_call_operand.vmem [shape: f32[16,1], index: 2, kind: output, shape index: {}]  }
   0x1   :  { %9 = vsyncpa [#allocation5 + $0x1], 0 }
   0x2   :  { %10 = vsyncpa [#allocation7], 0 }
   0x3   :  { %12 = vsyncpa [#allocation7 + $0x1], 0  ;;  %s761_s9 = smov 0   ;;  %s763_s10 = smov 0  }
   0x4   :  { %s765_s11 = smov 0   ;;  %s767_s12 = smov 0  }
   0x5   :  { %s769_s13 = smov 0   ;;  %s771_s14 = smov 0  }
   0x6   :  { %s773_s15 = smov 0   ;;  %s775_s16 = smov 0  }
   0x7   :  { %s777_s17 = smov 0   ;;  %s779_s18 = smov 0  }
   0x8   :  { %s781_s19 = smov 0  }
   0x9 LB: > { %s444_s20 = sadd.s32 4294967295, %s737_s19   ;;  %s30_s21 = sadd.s32 1, %s733_s18  ;;  %s737_s19 = sphi %s781_s19, %s18_s19   ;;  %s733_s18 = sphi %s779_s18, %s1055_s18   ;;  %s729_s17 = sphi %s777_s17, %s1054_s17   ;;  %s725_s16 = sphi %s775_s16, %s1053_s16   ;;  %s721_s15 = sphi %s773_s15, %s1052_s15   ;;  %s717_s14 = sphi %s771_s14, %s1051_s14   ;;  %s713_s13 = sphi %s769_s13, %s1050_s13   ;;  %s709_s12 = sphi %s767_s12, %s1049_s12   ;;  %s705_s11 = sphi %s765_s11, %s1048_s11   ;;  %s701_s10 = sphi %s763_s10, %s1047_s10   ;;  %s697_s9 = sphi %s761_s9, %s1046_s9  }
   0xa   : > { %p44_p0 = scmp.ne.s32.totalorder %s717_s14, %s713_s13  ;;  %p1030_p1 = scmp.eq.s32.totalorder %s737_s19, 0 }
   0xb   : > { %p50_p2 = scmp.ne.s32.totalorder %s713_s13, %s709_s12  ;;  %p820_p3 = scmp.eq.s32.totalorder %s444_s20, 0 }
   0xc   : > { %p46_p4 = por %p1030_p1, %p44_p0  ;;  %p1029_p5 = scmp.lt.s32.totalorder %s737_s19, 4 }
   0xd   : > { %p829_p6 = por %p820_p3, %p50_p2  ;;  %s126_s24 = sand.u32 1, %s717_s14  }
   0xe   : > { %s448_s25 = sshll.u32 %s126_s24, 3  ;;  %s449_s26 = sshll.u32 %s733_s18, 7 }
   0xf   : > { %s1034_s23 = scalar_select %p829_p6, 1, 0 }
  0x10   : > { %s838_s29 = scalar_lea.hbm %s1026_s0, %s449_s26  ;;  %s130_s30 = scalar_lea.vmem [#allocation4], %s448_s25 }
  0x11   : > { %s137_s3 = sshll.u32 %s130_s30, 4  ;;  %p844_p7 = pnand %p1029_p5, %p46_p4  ;;  %s840_s3 = int_to_ptr.vmem [resolvable:$true] %s137_s3 }
  0x12   : > { %s127_s5 = scalar_lea.sflag [#allocation5], %s126_s24  ;;  %s583_s6 = scalar_lea.hbm %s838_s29, 128 }
  0x13   : > { %p584_p10 = scmp.ne.s32.totalorder %s838_s29, %s583_s6  ;;  %p585_p11 = pneg %p844_p7 }
  0x14   : > { %s588_s12 = scalar_lea.hbm %s1026_s0, 256  ;;  %p589_p0 = scmp.lt.u32.totalorder %s838_s29, %s1026_s0 }
  0x15   : > { %p586_p12 = pnand %p585_p11, %p584_p10  ;;  %p590_p2 = scmp.lt.u32.totalorder %s588_s12, %s583_s6 }
  0x16   : > { %p592_p5 = scmp.lt.u32.totalorder %s583_s6, %s838_s29 }
  0x17   : > { %p587_p13 = pneg %p586_p12  ;;  %p591_p4 = por %p590_p2, %p589_p0 }
  0x19   : > { %p593_p1 = por %p592_p5, %p591_p4 }
  0x1b   : > { %p594_p8 = pnand %p593_p1, %p587_p13 }
  0x1d   : > { %597 = shalt.err (!%p594_p8)
}
  0x1e   : > { %s598_s24 = scalar_lea.vmem %s840_s3, 128  ;;  %s739_s26 = smov [#allocation4]  }
  0x1f   : > { %p599_p10 = scmp.ne.s32.totalorder %s840_s3, %s598_s24  ;;  %s603_s27 = sshll.u32 %s739_s26, 4  ;;  %s604_s27 = int_to_ptr.vmem [resolvable:$false] %s603_s27 }
  0x20   : > { %s605_s28 = scalar_lea.vmem %s604_s27, 256  ;;  %p606_p6 = scmp.lt.s32.totalorder %s840_s3, %s604_s27 }
  0x21   : > { %p601_p12 = pnand %p599_p10, %p585_p11  ;;  %p607_p0 = scmp.lt.s32.totalorder %s605_s28, %s598_s24 }
  0x23   : > { %p602_p9 = pneg %p601_p12  ;;  %p608_p2 = por %p607_p0, %p606_p6 }
  0x25   : > { %p609_p5 = pnand %p608_p2, %p602_p9 }
  0x27   : > { %612 = shalt.err (!%p609_p5)
}
  0x28   : > { %478 = dma.hbm_to_vmem [thread:$0]  (!%p844_p7), %s838_s29, 128, %s840_s3, %s127_s5  }
  0x29   : > { %p1036_p1 = scmp.lt.s32.totalorder %s737_s19, 5  ;;  %p1037_p6 = scmp.ge.s32.totalorder %s737_s19, 1 }
  0x2a   : > { %s37_s4 = sadd.s32 1, %s717_s14  ;;  %s27_s6 = sadd.s32 1, %s729_s17 }
  0x2b   : > { %p879_p8 = pnand %p1037_p6, %p1036_p1  ;;  %p28_p9 = scmp.ge.s32.totalorder %s27_s6, 2 }
  0x2c   : > { %s63_s7 = sadd.s32 1, %s705_s11  ;;  %p70_p11 = scmp.ne.s32.totalorder %s705_s11, %s701_s10 }
  0x2d   : > { %p76_p13 = scmp.ne.s32.totalorder %s701_s10, %s697_s9  ;;  %s1057_s6 = smov (%p28_p9, %s27_s6), 0 }
  0x2e   : > { %s1059_s21 = smov (!%p28_p9, %s30_s21), %s733_s18  ;;  %s60_s29 = ssub.s32 %s729_s17, %s1057_s6 }
  0x2f   : > { %s144_s3 = sand.u32 1, %s705_s11   ;;  %p32_p7 = scmp.ge.s32.totalorder %s1059_s21, 2 }
  0x30   : > { %p61_p4 = scmp.eq.s32.totalorder %s60_s29, 0  ;;  %p1039_p10 = scmp.eq.s32.totalorder %s737_s19, 0 }
  0x31   : > { %p906_p0 = por %p76_p13, %p820_p3  ;;  %s1061_s21 = smov (%p32_p7, %s1059_s21), 0 }
  0x32   : > { %p900_p12 = por %p70_p11, %p1039_p10  ;;  %s34_s12 = ssub.s32 %s733_s18, %s1061_s21 }
  0x33   : > { %s1041_s9 = scalar_select %p906_p0, 1, 0 }
  0x34   : > { %s913_s8 = scalar_select %p61_p4, %s705_s11, %s63_s7  }
  0x35   : > { %s450_s20 = sshll.u32 %s144_s3, 3  ;;  %p35_p2 = scmp.eq.s32.totalorder %s34_s12, 0 }
  0x36   : > { %s451_s25 = sshll.u32 %s729_s17, 7  ;;  %s148_s24 = scalar_lea.vmem [#allocation6], %s450_s20 }
  0x37   : > { %s155_s26 = sshll.u32 %s148_s24, 4  ;;  %s924_s29 = scalar_lea.hbm %s1027_s1, %s451_s25  ;;  %s926_s26 = int_to_ptr.vmem [resolvable:$true] %s155_s26 }
  0x38   : > { %s919_s27 = scalar_select %p35_p2, %s717_s14, %s37_s4  }
  0x39   : > { %p1042_p3 = scmp.lt.s32.totalorder %s737_s19, 4  ;;  %s145_s4 = scalar_lea.sflag [#allocation7], %s144_s3 }
  0x3a   : > { %s613_s12 = scalar_lea.hbm %s924_s29, 128  ;;  %s618_s5 = scalar_lea.hbm %s1027_s1, 256 }
  0x3b   : > { %p932_p5 = pnand %p1042_p3, %p900_p12  ;;  %p614_p1 = scmp.ne.s32.totalorder %s924_s29, %s613_s12 }
  0x3c   : > { %p619_p13 = scmp.lt.u32.totalorder %s924_s29, %s1027_s1  ;;  %p620_p7 = scmp.lt.u32.totalorder %s618_s5, %s613_s12 }
  0x3d   : > { %p615_p6 = pneg %p932_p5  ;;  %p622_p10 = scmp.lt.u32.totalorder %s613_s12, %s924_s29 }
  0x3e   : > { %p621_p4 = por %p620_p7, %p619_p13 }
  0x3f   : > { %p616_p9 = pnand %p615_p6, %p614_p1 }
  0x40   : > { %p623_p12 = por %p622_p10, %p621_p4 }
  0x41   : > { %p617_p11 = pneg %p616_p9 }
  0x43   : > { %p624_p2 = pnand %p623_p12, %p617_p11 }
  0x45   : > { %627 = shalt.err (!%p624_p2)
}
  0x46   : > { %s628_s3 = scalar_lea.vmem %s926_s26, 128  ;;  %s740_s22 = smov [#allocation6]  }
  0x47   : > { %p629_p3 = scmp.ne.s32.totalorder %s926_s26, %s628_s3  ;;  %s633_s20 = sshll.u32 %s740_s22, 4  ;;  %s634_s20 = int_to_ptr.vmem [resolvable:$false] %s633_s20 }
  0x48   : > { %s635_s25 = scalar_lea.vmem %s634_s20, 256  ;;  %p636_p0 = scmp.lt.s32.totalorder %s926_s26, %s634_s20 }
  0x49   : > { %p631_p1 = pnand %p629_p3, %p615_p6  ;;  %p637_p13 = scmp.lt.s32.totalorder %s635_s25, %s628_s3 }
  0x4b   : > { %p632_p9 = pneg %p631_p1  ;;  %p638_p7 = por %p637_p13, %p636_p0 }
  0x4d   : > { %p639_p4 = pnand %p638_p7, %p632_p9 }
  0x4f   : > { %642 = shalt.err (!%p639_p4)
}
  0x50   : > { %481 = dma.hbm_to_vmem [thread:$0]  (!%p932_p5), %s924_s29, 128, %s926_s26, %s145_s4  }
  0x51   : > { %164 = sbr.rel (%p879_p8) target bundleno = 781 (0x30d), region = 28  ;;  %s166_s12 = sand.u32 (!%p879_p8), 1, %s713_s13  }
  0x52   : > { %s964_s5 = sshll.u32 (!%p879_p8), %s166_s12, 3  ;;  %s167_s24 = scalar_lea.sflag (!%p879_p8), [#allocation5], %s166_s12 }
  0x53   : > { %s170_s28 = scalar_lea.vmem (!%p879_p8), [#allocation4], %s964_s5  ;;  %p1044_p6 = scmp.ne.s32.totalorder (!%p879_p8), %s1034_s23, 0 }
  0x58   : > { %688 = dma.done.wait (%p1044_p6), %s167_s24, 128  }
  0x59   : > { %690 = vsyncadd (%p1044_p6), %s167_s24, 4294967168  ;;  %s175_s7 = sand.u32 1, %s701_s10   ;;  %p1045_p8 = scmp.ne.s32.totalorder %s1041_s9, 0 }
  0x5a   : > { %s454_s26 = sshll.u32 %s175_s7, 3  ;;  %s176_s29 = scalar_lea.sflag [#allocation7], %s175_s7 }
  0x5b   : > { %s179_s30 = scalar_lea.vmem [#allocation6], %s454_s26 }
  0x5c   : > { %692 = dma.done.wait (%p1045_p8), %s176_s29, 128  }
  0x5d   : > { %694 = vsyncadd (%p1045_p8), %s176_s29, 4294967168  ;;  %p204_p0 = scmp.lt.s32.totalorder %s725_s16, 1  ;;  %p456_p5 = scmp.ne.s32.totalorder %s721_s15, 0 }
  0x5e   : > { %vm212_vm0 = vcmask (!%p456_p5), 7168   ;;  %v741_v0 = vmov (!%p456_p5), -1e+30   ;;  %v742_v1 = vmov (!%p456_p5), 0.0  }
  0x5f   : > { %s205_s4 = scalar_select %p204_p0, %s725_s16, 1 }
  0x60   : > { %211 = sbr.rel (%p456_p5) target bundleno = 103 (0x67), region = 40  ;;  %213 = vst.msk [vmem:[#allocation2] sm:$0xff] (!%p456_p5), %vm212_vm0, %v741_v0  ;;  %214 = vst.msk [vmem:[#allocation3] sm:$0xff] (!%p456_p5), %vm212_vm0, %v742_v1 }
  0x61   : > { %s455_s3 = sshll.u32 %s205_s4, 3 }
  0x62   : > { %s981_s23 = scalar_lea.vmem %s1028_s2, %s455_s3 }
  0x67 PF: > { %v216_v2 = vld [vmem:[%s179_s30] sm:$0xff]  ;;  %vm217_vm1 = vcmask 261120   ;;  %v743_v3 = vmov 0.0   ;;  %vm744_vm2 = vmmov 0   ;;  %v215_v4 = vld [vmem:[%s170_s28] sm:$0xff]  ;;  %v295_v5 = vlaneseq  ;;  %s459_s9 = sshll.u32 %s725_s16, 3 }
  0x68   : > { %466 = vmatprep.subr.mxu0 %v743_v3  ;;  %468 = vmatprep.mubr.msk.f32.mxu0 %vm744_vm2, %v743_v3  ;;  %s460_s25 = sshll.u32 %s721_s15, 3  ;;  %v300_v8 = vstv %s459_s9  ;;  %vm310_vm5 = vcmask 64512   ;;  %v745_v18 = vmov 0   ;;  %v309_v19 = vld [vmem:[#allocation2] sm:$0xff]  ;;  %vm332_vm6 = vcmask 7168   ;;  %v326_v30 = vld [vmem:[#allocation3] sm:$0xff] }
  0x69   : > { %467 = vmatpush3.xpose.msk.msra.mxu0 %vm217_vm1, %v216_v2  ;;  %v296_v6 = vshrl.u32 %v295_v5, 7  ;;  %v298_v7 = vand.u32 127, %v295_v5  ;;  %v303_v9 = vstv %s460_s25  ;;  %576 = vset.pattern.permute.xlu0 %v745_v18  ;;  %p461_p11 = scmp.ne.s32.totalorder %s721_s15, 1 }
  0x6b   : > { %v301_v10 = vadd.s32 %v300_v8, %v296_v6  ;;  %v304_v11 = vadd.s32 %v303_v9, %v298_v7  ;;  %vm307_vm4 = vcmp.lt.s32.totalorder %v298_v7, 4 }
  0x6c   : > { %469 = vmatmul.mubr.msk.f32.vlgmr.msra.gmra.mrb[0].mxu0 %vm217_vm1, %v215_v4 }
  0x6d   : > { %vm305_vm3 = vcmp.eq.s32.totalorder %v301_v10, %v304_v11 }
 0x13f   : > { %v290_v12 = vpop.f32.mrb[0].mxu0 }
 0x140   : > { %v294_v13 = vmul.f32 10.0, %v290_v12  ;;  %v470_v14 = vpop.f32.mrb[1].mxu0 }
 0x142   : > { %v306_v15 = vsel %vm305_vm3, -1e+30, %v294_v13 }
 0x143   : > { %v308_v16 = vsel %vm307_vm4, %v306_v15, -1e+30 }
 0x144   : > { %v311_v17 = vsel %vm310_vm5, %v308_v16, -inf }
 0x145   : > { %312 = vmax.xlane.f32.xlu0 %v311_v17 }
 0x1d2   : > { %v313_v20 = vpop.xlane.xlu0 %312 }
 0x1d3   : > { %v314_v21 = vmax.f32 %v309_v19, %v313_v20 }
 0x1d5   : > { %v315_v22 = vsub.f32 %v309_v19, %v314_v21  ;;  %334 = vst.msk [vmem:[#allocation2] sm:$0xff] %vm332_vm6, %v314_v21  ;;  %320 = vperm.xlu0 %576, %v314_v21  }
 0x1d7   : > { %v316_v28 = vmul.f32 1.442695, %v315_v22 }
 0x1dc   : > { %v342_v36 = vld [vmem:[#allocation2] sm:$0xff] (!%p461_p11) }
 0x254   : > { %v321_v23 = vpop.permute.xlu0 %320 }
 0x255   : > { %v323_v24 = vsub.f32 %v308_v16, %v321_v23 }
 0x257   : > { %v324_v25 = vmul.f32 1.442695, %v323_v24 }
 0x259   : > { %577 = vpow2.f32 %v324_v25 }
 0x25a   : > { %579 = vpow2.f32 %v316_v28 }
 0x263   : > { %v578_v26 = vpop.eup %577 }
 0x264   : > { %v328_v27 = vsel %vm310_vm5, %v578_v26, 0.0  ;;  %v580_v29 = vpop.eup %579 }
 0x265   : > { %329 = vadd.xlane.f32.xlu1 %v328_v27  ;;  %v327_v31 = vmul.f32 %v580_v29, %v326_v30 }
 0x2ef   : > { %338 = sbr.rel (%p461_p11) target bundleno = 781 (0x30d), region = 44 }
 0x2f2   : > { %v330_v32 = vpop.xlane.xlu1 %329 }
 0x2f3   : > { %v331_v33 = vadd.f32 %v330_v32, %v327_v31 }
 0x2f5   : > { %333 = vst.msk [vmem:[#allocation3] sm:$0xff] %vm332_vm6, %v331_v33 }
 0x2fc   : > { %v339_v34 = vld [vmem:[#allocation3] sm:$0xff] }
 0x2fd   : > { %581 = vlog2.f32 %v339_v34 }
 0x307   : > { %v582_v35 = vpop.eup %581 }
 0x308   : > { %v341_v37 = vmul.f32 0.6931472, %v582_v35 }
 0x30a   : > { %v343_v38 = vadd.f32 %v342_v36, %v341_v37 }
 0x30c   : > { %344 = vst.msk [vmem:[%s981_s23] sm:$0xff] %vm332_vm6, %v343_v38 }
 0x30d PF: > { %s18_s19 = sadd.s32 1, %s737_s19   ;;  %s1046_s9 = smov %s701_s10 }
 0x30e   : > { %p15_p10 = scmp.ge.s32.totalorder %s18_s19, 6   ;;  %s1047_s10 = smov %s705_s11 }
 0x30f   : > { %s1048_s11 = smov %s913_s8  ;;  %s1049_s12 = smov %s713_s13 }
 0x310   : > { %s1050_s13 = smov %s717_s14  ;;  %s1051_s14 = smov %s919_s27 }
 0x311   : > { %s1052_s15 = smov %s729_s17  ;;  %s1053_s16 = smov %s733_s18 }
 0x312   : > { %s1054_s17 = smov %s1057_s6  ;;  %s1055_s18 = smov %s1061_s21 }
 0x313   :  { %17 = sbr.rel (!%p15_p10) target bundleno = 9 (0x9), region = 89 }
 0x31a   :  { %364 = vsyncpa [#allocation5], 1 }
 0x31b   :  { %366 = vsyncpa [#allocation5 + $0x1], 1 }
 0x31c   :  { %367 = vsyncpa [#allocation7], 1 }
 0x31d   :  { %369 = vsyncpa [#allocation7 + $0x1], 1 }

</bundles_post_ra>
